<compile_context>
chip_gen: v7x
topology: tpu7x:2x2x1
jax: 0.10.0
libtpu: 0.0.40
codegen_flags: <defaults>
</compile_context>

<pallas_src>
import functools

import jax
import jax.numpy as jnp
from jax import lax
from jax.experimental import pallas as pl
from jax.experimental.pallas import tpu as pltpu


_LEAD = 128  # lane-aligned leading/trailing flat pad (must be >= W + 1)


# ----------------------------------------------------------------------------
# Fused kernel: bilinear-up(s) -> concat(f, s_up) -> conv1(3x3) -> conv2(3x3)
# ----------------------------------------------------------------------------
def _base_up_kernel(mask_ref, wup_ref, w1_ref, w2_ref, f_ref, s_ref, o_ref,
                    xpad_ref, y1pad_ref, *, H, W, Cf, nb):
    """One grid step = nb images.

    mask_ref : (2, M)          f32  row 0: zero where w==0, row 1: zero where w==W-1
    wup_ref  : (Ms, M)         f32  kron(interp_h, interp_w) bilinear matrix
    w1_ref   : (Cmid, 9*Cin)   bf16 packed conv1 weights, col index = t*Cin + c
    w2_ref   : (Cout, 9*Cmid)  bf16 packed conv2 weights
    f_ref    : (nb, Cf, M)     f32  lane-dense f
    s_ref    : (nb, Cs, Ms)    f32  lane-dense s (low resolution)
    o_ref    : (nb, Cout, M)   f32  lane-dense output
    xpad_ref : (Cin, P)        f32  flat row-padded concat(f, s_up), P = M + 2*_LEAD
    y1pad_ref: (Cmid, P)       f32  flat row-padded conv1 output

    Flat layout: interior pixel m = h*W + w lives at flat index _LEAD + m; the
    3x3 tap (kh, kw) of pixel m is the contiguous slice starting at
    _LEAD + (kh-1)*W + (kw-1).  Row (H) padding is real zeros in the lead/trail
    pads; column (W) wrap-around for kw=0/2 is cancelled with the lane masks.
    """
    M = H * W
    lm = mask_ref[0:1, :]          # (1, M) left-edge mask  (kw == 0 taps)
    rm = mask_ref[1:2, :]          # (1, M) right-edge mask (kw == 2 taps)

    # Zero only the pad slices (the interiors are fully overwritten below).
    for ref in (xpad_ref, y1pad_ref):
        C, P = ref.shape
        ref[:, :_LEAD] = jnp.zeros((C, _LEAD), ref.dtype)
        ref[:, _LEAD + M:] = jnp.zeros((C, P - _LEAD - M), ref.dtype)

    def im2col(src_ref):
        # Pack the 9 taps into one (9*C, M) bf16 tile; contraction index is
        # t*C + c with t = kh*3 + kw, matching the packed weight layout.
        cols = []
        for kh in range(3):
            for kw in range(3):
                off = _LEAD + (kh - 1) * W + (kw - 1)
                a = src_ref[:, off:off + M]          # (C, M) f32, contiguous slice
                if kw == 0:
                    a = a * lm
                elif kw == 2:
                    a = a * rm
                cols.append(a)
        return jnp.concatenate(cols, axis=0).astype(jnp.bfloat16)

    for b in range(nb):
        # Bilinear upsample (align_corners=False): one dot with the kron
        # interpolation matrix lands s_up directly in lane-dense (Cs, M).
        s_up = jnp.dot(s_ref[b], wup_ref[...],
                       preferred_element_type=jnp.float32)          # (Cs, M)

        # concat((f, s_up), channel dim) straight into the row-padded tile.
        xpad_ref[:Cf, _LEAD:_LEAD + M] = f_ref[b]
        xpad_ref[Cf:, _LEAD:_LEAD + M] = s_up

        # conv1: single K = 9*Cin matmul (bf16 operands, f32 accumulation).
        y1 = jnp.dot(w1_ref[...], im2col(xpad_ref),
                     preferred_element_type=jnp.float32)            # (Cmid, M)
        y1pad_ref[:, _LEAD:_LEAD + M] = y1                          # stays f32

        # conv2: single K = 9*Cmid matmul.
        y2 = jnp.dot(w2_ref[...], im2col(y1pad_ref),
                     preferred_element_type=jnp.float32)            # (Cout, M)
        o_ref[b] = y2.astype(o_ref.dtype)


def _pick_images_per_step(n):
    # Amortize per-grid-step overhead, but keep >= 2 steps so v7x megacore
    # still splits work across both TensorCores.
    if n <= 2:
        return 1
    for d in range(min(8, n // 2), 0, -1):
        if n % d == 0:
            return d
    return 1


def _fused_base_up(f_flat, s_flat, wup, w1p, w2p, masks, H, W):
    N, Cf, M = f_flat.shape
    _, Cs, Ms = s_flat.shape
    Cin = Cf + Cs
    Cmid = w1p.shape[0]
    Cout = w2p.shape[0]
    P = M + 2 * _LEAD

    nb = _pick_images_per_step(N)
    steps = N // nb

    kernel = functools.partial(_base_up_kernel, H=H, W=W, Cf=Cf, nb=nb)

    return pl.pallas_call(
        kernel,
        out_shape=jax.ShapeDtypeStruct((N, Cout, M), jnp.float32),
        grid=(steps,),
        in_specs=[
            pl.BlockSpec((2, M), lambda i: (0, 0)),                # edge masks (resident)
            pl.BlockSpec((Ms, M), lambda i: (0, 0)),               # bilinear matrix (resident)
            pl.BlockSpec((Cmid, 9 * Cin), lambda i: (0, 0)),       # packed conv1 weights
            pl.BlockSpec((Cout, 9 * Cmid), lambda i: (0, 0)),      # packed conv2 weights
            pl.BlockSpec((nb, Cf, M), lambda i: (i, 0, 0)),        # f slab (per step)
            pl.BlockSpec((nb, Cs, Ms), lambda i: (i, 0, 0)),       # s slab (per step)
        ],
        out_specs=pl.BlockSpec((nb, Cout, M), lambda i: (i, 0, 0)),
        scratch_shapes=[
            pltpu.VMEM((Cin, P), jnp.float32),   # flat row-padded concat(f, s_up)
            pltpu.VMEM((Cmid, P), jnp.float32),  # flat row-padded conv1 output
        ],
        compiler_params=pltpu.CompilerParams(
            dimension_semantics=("parallel",),   # feeds both v7x TensorCores
            vmem_limit_bytes=32 * 1024 * 1024,   # far above actual ~100 KiB use
        ),
    )(masks, wup, w1p, w2p, f_flat, s_flat)


# ----------------------------------------------------------------------------
# Bilinear interpolation matrix (matches F.interpolate, mode='bilinear',
# align_corners=False, explicit output size).
# ----------------------------------------------------------------------------
def _interp_matrix(out_size, in_size):
    scale = in_size / out_size
    src = (jnp.arange(out_size, dtype=jnp.float32) + 0.5) * scale - 0.5
    src = jnp.maximum(src, 0.0)                           # PyTorch clamps negative src
    i0 = jnp.minimum(jnp.floor(src).astype(jnp.int32), in_size - 1)
    i1 = jnp.minimum(i0 + 1, in_size - 1)
    frac = src - i0.astype(jnp.float32)
    cols = jnp.arange(in_size, dtype=jnp.int32)[None, :]
    m = ((cols == i0[:, None]).astype(jnp.float32) * (1.0 - frac)[:, None]
         + (cols == i1[:, None]).astype(jnp.float32) * frac[:, None])
    return m                                              # (out_size, in_size)


# ----------------------------------------------------------------------------
# BaseUp forward
# ----------------------------------------------------------------------------
def base_up_forward(f_nchw, s_nchw, w1_oihw, w2_oihw):
    n, cf, h, w = f_nchw.shape
    _, cs, hs, ws = s_nchw.shape
    cmid = w1_oihw.shape[0]
    cout = w2_oihw.shape[0]
    cin = cf + cs
    m = h * w
    ms = hs * ws

    assert w + 1 <= _LEAD, "flat row-padding requires W <= 127"

    # Lane-dense flat views (free reshapes; no layout transposes, no casts).
    f_flat = f_nchw.reshape(n, cf, m)
    s_flat = s_nchw.reshape(n, cs, ms)

    # Combined bilinear-upsample matrix: s_up[c, h*W+w] = (s_flat @ wup)[c, h*W+w]
    # with wup[p*Ws+q, h*W+w] = interp_h[h, p] * interp_w[w, q].
    wh = _interp_matrix(h, hs)                                     # (h, hs)
    ww = _interp_matrix(w, ws)                                     # (w, ws)
    wup = jnp.einsum('hp,wq->pqhw', wh, ww).reshape(ms, m)

    # Packed per-tap weights: col index = (kh*3 + kw)*C + c  (bf16 MXU operands).
    w1p = jnp.transpose(w1_oihw, (0, 2, 3, 1)).reshape(cmid, 9 * cin).astype(jnp.bfloat16)
    w2p = jnp.transpose(w2_oihw, (0, 2, 3, 1)).reshape(cout, 9 * cmid).astype(jnp.bfloat16)

    # Column-edge masks: kw=0 / kw=2 tap slices wrap across image rows; those
    # positions must contribute zero.
    col = jnp.arange(m, dtype=jnp.int32) % w
    masks = jnp.stack([(col > 0), (col < w - 1)]).astype(jnp.float32)   # (2, M)

    out = _fused_base_up(f_flat, s_flat, wup, w1p, w2p, masks, h, w)    # (n, cout, M)
    return out.reshape(n, cout, h, w)                                    # NCHW, free reshape


# ----------------------------------------------------------------------------
# Pure-JAX reference (test only): gather-based bilinear + XLA convs in f32.
# ----------------------------------------------------------------------------
def _bilinear_resize_reference(x, out_h, out_w):
    def src_idx(out_size, in_size):
        scale = in_size / out_size
        src = (jnp.arange(out_size, dtype=jnp.float32) + 0.5) * scale - 0.5
        src = jnp.maximum(src, 0.0)
        i0 = jnp.minimum(jnp.floor(src).astype(jnp.int32), in_size - 1)
        i1 = jnp.minimum(i0 + 1, in_size - 1)
        return i0, i1, src - i0.astype(jnp.float32)

    in_h, in_w = x.shape[-2:]
    h0, h1, hf = src_idx(out_h, in_h)
    w0, w1_, wf = src_idx(out_w, in_w)
    x00 = x[:, :, h0[:, None], w0[None, :]]
    x01 = x[:, :, h0[:, None], w1_[None, :]]
    x10 = x[:, :, h1[:, None], w0[None, :]]
    x11 = x[:, :, h1[:, None], w1_[None, :]]
    hf = hf[:, None]
    wf = wf[None, :]
    top = x00 * (1.0 - wf) + x01 * wf
    bot = x10 * (1.0 - wf) + x11 * wf
    return top * (1.0 - hf) + bot * hf


def _reference(f_nchw, s_nchw, w1_oihw, w2_oihw):
    h, w = f_nchw.shape[-2:]
    s_up = _bilinear_resize_reference(s_nchw, h, w)
    x = jnp.concatenate([f_nchw, s_up], axis=1)
    dn = ("NCHW", "OIHW", "NCHW")
    y = lax.conv_general_dilated(x, w1_oihw, (1, 1), "SAME", dimension_numbers=dn)
    y = lax.conv_general_dilated(y, w2_oihw, (1, 1), "SAME", dimension_numbers=dn)
    return y


if __name__ == "__main__":
    # BaseUp(f_channels=4, s_channels=4, out_channels=8, bias=False)
    N, Cf, Cs, Cout = 2, 4, 4, 8
    H, W = 16, 16          # f spatial
    Hs, Ws = 8, 8          # s spatial (upsampled to (H, W) in forward)

    key = jax.random.PRNGKey(0)
    kf, ks, kw1, kw2 = jax.random.split(key, 4)
    f = jax.random.normal(kf, (N, Cf, H, W), dtype=jnp.float32)
    s = jax.random.normal(ks, (N, Cs, Hs, Ws), dtype=jnp.float32)
    # conv1: (out_channels, s_channels + f_channels, 3, 3); conv2: (out, out, 3, 3)
    w1 = 0.1 * jax.random.normal(kw1, (Cout, Cs + Cf, 3, 3), dtype=jnp.float32)
    w2 = 0.1 * jax.random.normal(kw2, (Cout, Cout, 3, 3), dtype=jnp.float32)

    out = jax.jit(base_up_forward)(f, s, w1, w2)
    out = jax.block_until_ready(out)

    ref = jax.block_until_ready(_reference(f, s, w1, w2))
    assert out.shape == (N, Cout, H, W), out.shape
    # bf16 matmul operands (f32 accumulation) vs f32 reference -> bf16 tolerance.
    assert jnp.allclose(out, ref, atol=3e-2, rtol=3e-2), \
        float(jnp.max(jnp.abs(out - ref)))

    print("KERNEL_OK")
</pallas_src>

<mosaic_0001>
module attributes {stable_mosaic.version = 11 : i64} {
  func.func @_base_up_kernel(%arg0: i32, %arg1: memref<2x256xf32, #tpu.memory_space<vmem>>, %arg2: memref<64x256xf32, #tpu.memory_space<vmem>>, %arg3: memref<8x72xbf16, #tpu.memory_space<vmem>>, %arg4: memref<8x72xbf16, #tpu.memory_space<vmem>>, %arg5: memref<1x4x256xf32, #tpu.memory_space<vmem>>, %arg6: memref<1x4x64xf32, #tpu.memory_space<vmem>>, %arg7: memref<1x8x256xf32, #tpu.memory_space<vmem>>, %arg8: memref<8x512xf32, #tpu.memory_space<vmem>>, %arg9: memref<8x512xf32, #tpu.memory_space<vmem>>) attributes {dimension_semantics = [#tpu.dimension_semantics<parallel>], iteration_bounds = array<i64: 2>, scalar_prefetch = 0 : i64, scratch_operands = 2 : i64, tpu.core_type = #tpu.core_type<tc>, window_params = [{pipeline_mode = #tpu.pipeline_mode<synchronous>, transform_indices = @transform_0, window_bounds = array<i64: 2, 256>}, {pipeline_mode = #tpu.pipeline_mode<synchronous>, transform_indices = @transform_1, window_bounds = array<i64: 64, 256>}, {pipeline_mode = #tpu.pipeline_mode<synchronous>, transform_indices = @transform_2, window_bounds = array<i64: 8, 72>}, {pipeline_mode = #tpu.pipeline_mode<synchronous>, transform_indices = @transform_3, window_bounds = array<i64: 8, 72>}, {transform_indices = @transform_4, window_bounds = array<i64: 1, 4, 256>}, {transform_indices = @transform_5, window_bounds = array<i64: 1, 4, 64>}, {transform_indices = @transform_6, window_bounds = array<i64: 1, 8, 256>}]} {
    %c0 = arith.constant 0 : index
    %c0_0 = arith.constant 0 : index
    %0 = vector.load %arg1[%c0, %c0_0] : memref<2x256xf32, #tpu.memory_space<vmem>>, vector<1x256xf32>
    %c1 = arith.constant 1 : index
    %c0_1 = arith.constant 0 : index
    %1 = vector.load %arg1[%c1, %c0_1] : memref<2x256xf32, #tpu.memory_space<vmem>>, vector<1x256xf32>
    %cst = arith.constant 0.000000e+00 : f32
    %2 = vector.broadcast %cst : f32 to vector<8x128xf32>
    %c0_2 = arith.constant 0 : index
    %c0_3 = arith.constant 0 : index
    %3 = vector.load %arg8[%c0_2, %c0_3] : memref<8x512xf32, #tpu.memory_space<vmem>>, vector<8x128xf32>
    tpu.vector_store %arg8[%c0_2, %c0_3], %2 {strides = array<i32>} : memref<8x512xf32, #tpu.memory_space<vmem>>, vector<8x128xf32>,
    %cst_4 = arith.constant 0.000000e+00 : f32
    %4 = vector.broadcast %cst_4 : f32 to vector<8x128xf32>
    %c0_5 = arith.constant 0 : index
    %c384 = arith.constant 384 : index
    %5 = vector.load %arg8[%c0_5, %c384] : memref<8x512xf32, #tpu.memory_space<vmem>>, vector<8x128xf32>
    tpu.vector_store %arg8[%c0_5, %c384], %4 {strides = array<i32>} : memref<8x512xf32, #tpu.memory_space<vmem>>, vector<8x128xf32>,
    %cst_6 = arith.constant 0.000000e+00 : f32
    %6 = vector.broadcast %cst_6 : f32 to vector<8x128xf32>
    %c0_7 = arith.constant 0 : index
    %c0_8 = arith.constant 0 : index
    %7 = vector.load %arg9[%c0_7, %c0_8] : memref<8x512xf32, #tpu.memory_space<vmem>>, vector<8x128xf32>
    tpu.vector_store %arg9[%c0_7, %c0_8], %6 {strides = array<i32>} : memref<8x512xf32, #tpu.memory_space<vmem>>, vector<8x128xf32>,
    %cst_9 = arith.constant 0.000000e+00 : f32
    %8 = vector.broadcast %cst_9 : f32 to vector<8x128xf32>
    %c0_10 = arith.constant 0 : index
    %c384_11 = arith.constant 384 : index
    %9 = vector.load %arg9[%c0_10, %c384_11] : memref<8x512xf32, #tpu.memory_space<vmem>>, vector<8x128xf32>
    tpu.vector_store %arg9[%c0_10, %c384_11], %8 {strides = array<i32>} : memref<8x512xf32, #tpu.memory_space<vmem>>, vector<8x128xf32>,
    %c0_12 = arith.constant 0 : index
    %c0_13 = arith.constant 0 : index
    %c0_14 = arith.constant 0 : index
    %10 = vector.load %arg6[%c0_12, %c0_13, %c0_14] : memref<1x4x64xf32, #tpu.memory_space<vmem>>, vector<1x4x64xf32>
    %11 = vector.shape_cast %10 : vector<1x4x64xf32> to vector<4x64xf32>
    %c0_15 = arith.constant 0 : index
    %c0_16 = arith.constant 0 : index
    %12 = vector.load %arg2[%c0_15, %c0_16] : memref<64x256xf32, #tpu.memory_space<vmem>>, vector<64x256xf32>
    %cst_17 = arith.constant dense<0.000000e+00> : vector<4x256xf32>
    %13 = tpu.matmul %11, %12, %cst_17 {dimension_numbers = #tpu.dot_dimension_numbers<[1], [0], [0], [1], [0, 0, 1, 1], [], []>} : vector<4x64xf32>, vector<64x256xf32>, vector<4x256xf32> -> vector<4x256xf32>
    %c0_18 = arith.constant 0 : index
    %c0_19 = arith.constant 0 : index
    %c0_20 = arith.constant 0 : index
    %14 = vector.load %arg5[%c0_18, %c0_19, %c0_20] : memref<1x4x256xf32, #tpu.memory_space<vmem>>, vector<1x4x256xf32>
    %15 = vector.shape_cast %14 : vector<1x4x256xf32> to vector<4x256xf32>
    %c0_21 = arith.constant 0 : index
    %c128 = arith.constant 128 : index
    %16 = vector.load %arg8[%c0_21, %c128] : memref<8x512xf32, #tpu.memory_space<vmem>>, vector<4x256xf32>
    tpu.vector_store %arg8[%c0_21, %c128], %15 {strides = array<i32>} : memref<8x512xf32, #tpu.memory_space<vmem>>, vector<4x256xf32>,
    %c4 = arith.constant 4 : index
    %c128_22 = arith.constant 128 : index
    %17 = vector.load %arg8[%c4, %c128_22] : memref<8x512xf32, #tpu.memory_space<vmem>>, vector<4x256xf32>
    tpu.vector_store %arg8[%c4, %c128_22], %13 {strides = array<i32>} : memref<8x512xf32, #tpu.memory_space<vmem>>, vector<4x256xf32>,
    %c0_23 = arith.constant 0 : index
    %c0_24 = arith.constant 0 : index
    %18 = vector.load %arg3[%c0_23, %c0_24] : memref<8x72xbf16, #tpu.memory_space<vmem>>, vector<8x72xbf16>
    %c0_25 = arith.constant 0 : index
    %c111 = arith.constant 111 : index
    %19 = vector.load %arg8[%c0_25, %c111] : memref<8x512xf32, #tpu.memory_space<vmem>>, vector<8x256xf32>
    %20 = vector.broadcast %0 : vector<1x256xf32> to vector<8x256xf32>
    %21 = arith.mulf %19, %20 : vector<8x256xf32>
    %c0_26 = arith.constant 0 : index
    %c112 = arith.constant 112 : index
    %22 = vector.load %arg8[%c0_26, %c112] : memref<8x512xf32, #tpu.memory_space<vmem>>, vector<8x256xf32>
    %c0_27 = arith.constant 0 : index
    %c113 = arith.constant 113 : index
    %23 = vector.load %arg8[%c0_27, %c113] : memref<8x512xf32, #tpu.memory_space<vmem>>, vector<8x256xf32>
    %24 = vector.broadcast %1 : vector<1x256xf32> to vector<8x256xf32>
    %25 = arith.mulf %23, %24 : vector<8x256xf32>
    %c0_28 = arith.constant 0 : index
    %c127 = arith.constant 127 : index
    %26 = vector.load %arg8[%c0_28, %c127] : memref<8x512xf32, #tpu.memory_space<vmem>>, vector<8x256xf32>
    %27 = vector.broadcast %0 : vector<1x256xf32> to vector<8x256xf32>
    %28 = arith.mulf %26, %27 : vector<8x256xf32>
    %c0_29 = arith.constant 0 : index
    %c128_30 = arith.constant 128 : index
    %29 = vector.load %arg8[%c0_29, %c128_30] : memref<8x512xf32, #tpu.memory_space<vmem>>, vector<8x256xf32>
    %c0_31 = arith.constant 0 : index
    %c129 = arith.constant 129 : index
    %30 = vector.load %arg8[%c0_31, %c129] : memref<8x512xf32, #tpu.memory_space<vmem>>, vector<8x256xf32>
    %31 = vector.broadcast %1 : vector<1x256xf32> to vector<8x256xf32>
    %32 = arith.mulf %30, %31 : vector<8x256xf32>
    %c0_32 = arith.constant 0 : index
    %c143 = arith.constant 143 : index
    %33 = vector.load %arg8[%c0_32, %c143] : memref<8x512xf32, #tpu.memory_space<vmem>>, vector<8x256xf32>
    %34 = vector.broadcast %0 : vector<1x256xf32> to vector<8x256xf32>
    %35 = arith.mulf %33, %34 : vector<8x256xf32>
    %c0_33 = arith.constant 0 : index
    %c144 = arith.constant 144 : index
    %36 = vector.load %arg8[%c0_33, %c144] : memref<8x512xf32, #tpu.memory_space<vmem>>, vector<8x256xf32>
    %c0_34 = arith.constant 0 : index
    %c145 = arith.constant 145 : index
    %37 = vector.load %arg8[%c0_34, %c145] : memref<8x512xf32, #tpu.memory_space<vmem>>, vector<8x256xf32>
    %38 = vector.broadcast %1 : vector<1x256xf32> to vector<8x256xf32>
    %39 = arith.mulf %37, %38 : vector<8x256xf32>
    %40 = tpu.concatenate %21, %22, %25, %28, %29, %32, %35, %36, %39 in 0 : vector<8x256xf32>, vector<8x256xf32>, vector<8x256xf32>, vector<8x256xf32>, vector<8x256xf32>, vector<8x256xf32>, vector<8x256xf32>, vector<8x256xf32>, vector<8x256xf32> -> vector<72x256xf32>
    %41 = arith.truncf %40 : vector<72x256xf32> to vector<72x256xbf16>
    %cst_35 = arith.constant dense<0.000000e+00> : vector<8x256xf32>
    %42 = tpu.matmul %18, %41, %cst_35 {dimension_numbers = #tpu.dot_dimension_numbers<[1], [0], [0], [1], [0, 0, 1, 1], [], []>} : vector<8x72xbf16>, vector<72x256xbf16>, vector<8x256xf32> -> vector<8x256xf32>
    %c0_36 = arith.constant 0 : index
    %c128_37 = arith.constant 128 : index
    %43 = vector.load %arg9[%c0_36, %c128_37] : memref<8x512xf32, #tpu.memory_space<vmem>>, vector<8x256xf32>
    tpu.vector_store %arg9[%c0_36, %c128_37], %42 {strides = array<i32>} : memref<8x512xf32, #tpu.memory_space<vmem>>, vector<8x256xf32>,
    %c0_38 = arith.constant 0 : index
    %c0_39 = arith.constant 0 : index
    %44 = vector.load %arg4[%c0_38, %c0_39] : memref<8x72xbf16, #tpu.memory_space<vmem>>, vector<8x72xbf16>
    %c0_40 = arith.constant 0 : index
    %c111_41 = arith.constant 111 : index
    %45 = vector.load %arg9[%c0_40, %c111_41] : memref<8x512xf32, #tpu.memory_space<vmem>>, vector<8x256xf32>
    %46 = vector.broadcast %0 : vector<1x256xf32> to vector<8x256xf32>
    %47 = arith.mulf %45, %46 : vector<8x256xf32>
    %c0_42 = arith.constant 0 : index
    %c112_43 = arith.constant 112 : index
    %48 = vector.load %arg9[%c0_42, %c112_43] : memref<8x512xf32, #tpu.memory_space<vmem>>, vector<8x256xf32>
    %c0_44 = arith.constant 0 : index
    %c113_45 = arith.constant 113 : index
    %49 = vector.load %arg9[%c0_44, %c113_45] : memref<8x512xf32, #tpu.memory_space<vmem>>, vector<8x256xf32>
    %50 = vector.broadcast %1 : vector<1x256xf32> to vector<8x256xf32>
    %51 = arith.mulf %49, %50 : vector<8x256xf32>
    %c0_46 = arith.constant 0 : index
    %c127_47 = arith.constant 127 : index
    %52 = vector.load %arg9[%c0_46, %c127_47] : memref<8x512xf32, #tpu.memory_space<vmem>>, vector<8x256xf32>
    %53 = vector.broadcast %0 : vector<1x256xf32> to vector<8x256xf32>
    %54 = arith.mulf %52, %53 : vector<8x256xf32>
    %c0_48 = arith.constant 0 : index
    %c128_49 = arith.constant 128 : index
    %55 = vector.load %arg9[%c0_48, %c128_49] : memref<8x512xf32, #tpu.memory_space<vmem>>, vector<8x256xf32>
    %c0_50 = arith.constant 0 : index
    %c129_51 = arith.constant 129 : index
    %56 = vector.load %arg9[%c0_50, %c129_51] : memref<8x512xf32, #tpu.memory_space<vmem>>, vector<8x256xf32>
    %57 = vector.broadcast %1 : vector<1x256xf32> to vector<8x256xf32>
    %58 = arith.mulf %56, %57 : vector<8x256xf32>
    %c0_52 = arith.constant 0 : index
    %c143_53 = arith.constant 143 : index
    %59 = vector.load %arg9[%c0_52, %c143_53] : memref<8x512xf32, #tpu.memory_space<vmem>>, vector<8x256xf32>
    %60 = vector.broadcast %0 : vector<1x256xf32> to vector<8x256xf32>
    %61 = arith.mulf %59, %60 : vector<8x256xf32>
    %c0_54 = arith.constant 0 : index
    %c144_55 = arith.constant 144 : index
    %62 = vector.load %arg9[%c0_54, %c144_55] : memref<8x512xf32, #tpu.memory_space<vmem>>, vector<8x256xf32>
    %c0_56 = arith.constant 0 : index
    %c145_57 = arith.constant 145 : index
    %63 = vector.load %arg9[%c0_56, %c145_57] : memref<8x512xf32, #tpu.memory_space<vmem>>, vector<8x256xf32>
    %64 = vector.broadcast %1 : vector<1x256xf32> to vector<8x256xf32>
    %65 = arith.mulf %63, %64 : vector<8x256xf32>
    %66 = tpu.concatenate %47, %48, %51, %54, %55, %58, %61, %62, %65 in 0 : vector<8x256xf32>, vector<8x256xf32>, vector<8x256xf32>, vector<8x256xf32>, vector<8x256xf32>, vector<8x256xf32>, vector<8x256xf32>, vector<8x256xf32>, vector<8x256xf32> -> vector<72x256xf32>
    %67 = arith.truncf %66 : vector<72x256xf32> to vector<72x256xbf16>
    %cst_58 = arith.constant dense<0.000000e+00> : vector<8x256xf32>
    %68 = tpu.matmul %44, %67, %cst_58 {dimension_numbers = #tpu.dot_dimension_numbers<[1], [0], [0], [1], [0, 0, 1, 1], [], []>} : vector<8x72xbf16>, vector<72x256xbf16>, vector<8x256xf32> -> vector<8x256xf32>
    %c0_59 = arith.constant 0 : index
    %c0_60 = arith.constant 0 : index
    %c0_61 = arith.constant 0 : index
    %69 = vector.load %arg7[%c0_59, %c0_60, %c0_61] : memref<1x8x256xf32, #tpu.memory_space<vmem>>, vector<1x8x256xf32>
    %70 = vector.shape_cast %69 : vector<1x8x256xf32> to vector<8x256xf32>
    %71 = vector.shape_cast %68 : vector<8x256xf32> to vector<1x8x256xf32>
    tpu.vector_store %arg7[%c0_59, %c0_60, %c0_61], %71 {strides = array<i32>} : memref<1x8x256xf32, #tpu.memory_space<vmem>>, vector<1x8x256xf32>,
    return
  }
  func.func @transform_0(%arg0: i32) -> (i32, i32) {
    %c0_i32 = arith.constant 0 : i32
    %c0_i32_0 = arith.constant 0 : i32
    %c0_i32_1 = arith.constant 0 : i32
    return %c0_i32, %c0_i32_0 : i32, i32
  }
  func.func @transform_1(%arg0: i32) -> (i32, i32) {
    %c0_i32 = arith.constant 0 : i32
    %c0_i32_0 = arith.constant 0 : i32
    %c0_i32_1 = arith.constant 0 : i32
    return %c0_i32, %c0_i32_0 : i32, i32
  }
  func.func @transform_2(%arg0: i32) -> (i32, i32) {
    %c0_i32 = arith.constant 0 : i32
    %c0_i32_0 = arith.constant 0 : i32
    %c0_i32_1 = arith.constant 0 : i32
    return %c0_i32, %c0_i32_0 : i32, i32
  }
  func.func @transform_3(%arg0: i32) -> (i32, i32) {
    %c0_i32 = arith.constant 0 : i32
    %c0_i32_0 = arith.constant 0 : i32
    %c0_i32_1 = arith.constant 0 : i32
    return %c0_i32, %c0_i32_0 : i32, i32
  }
  func.func @transform_4(%arg0: i32) -> (i32, i32, i32) {
    %c0_i32 = arith.constant 0 : i32
    %c0_i32_0 = arith.constant 0 : i32
    %c0_i32_1 = arith.constant 0 : i32
    return %arg0, %c0_i32, %c0_i32_0 : i32, i32, i32
  }
  func.func @transform_5(%arg0: i32) -> (i32, i32, i32) {
    %c0_i32 = arith.constant 0 : i32
    %c0_i32_0 = arith.constant 0 : i32
    %c0_i32_1 = arith.constant 0 : i32
    return %arg0, %c0_i32, %c0_i32_0 : i32, i32, i32
  }
  func.func @transform_6(%arg0: i32) -> (i32, i32, i32) {
    %c0_i32 = arith.constant 0 : i32
    %c0_i32_0 = arith.constant 0 : i32
    %c0_i32_1 = arith.constant 0 : i32
    return %arg0, %c0_i32, %c0_i32_0 : i32, i32, i32
  }
}

</mosaic_0001>

<bundles_post_ra>
// kernel: base_up_forward.1
= control target key start
LH: loop header
LB: loop body
LE: loop exit
PB: predicated region body
PF: predicated region fallthrough
CT: control target
= control target key end

     0   :  { %s1249_s21 = smov 0   ;;  %s1559_s0 = inlined_call_operand.vmem [shape: f32[2,256], index: 0, kind: input, shape index: {}]   ;;  %s1560_s1 = inlined_call_operand.vmem [shape: f32[64,256], index: 1, kind: input, shape index: {}]   ;;  %s1561_s2 = inlined_call_operand.vmem [shape: bf16[8,72], index: 2, kind: input, shape index: {}]   ;;  %s1562_s3 = inlined_call_operand.vmem [shape: bf16[8,72], index: 3, kind: input, shape index: {}]   ;;  %s1563_s4 = inlined_call_operand.vmem [shape: f32[2,4,256], index: 4, kind: input, shape index: {}]   ;;  %s1564_s5 = inlined_call_operand.vmem [shape: f32[2,4,64], index: 5, kind: input, shape index: {}]   ;;  %s1565_s6 = inlined_call_operand.vmem [shape: f32[2,8,256], index: 6, kind: output, shape index: {}]  }
   0x1 LB: > { %s1053_s22 = sadd.s32 4294967295, %s1198_s21   ;;  %p1057_p0 = scmp.ge.s32.totalorder %s1198_s21, 1  ;;  %s1198_s21 = sphi %s1249_s21, %s16_s21  }
   0x2   : > { %p221_p1 = scmp.lt.s32.totalorder %s1198_s21, 3 }
   0x4   : > { %p222_p2 = pnand %p1057_p0, %p221_p1 }
   0x5   : > { %v279_v0 = vld [vmem:[%s1560_s1 + $0x8] sm:$0xff] (!%p222_p2)  ;;  %v281_v1 = vld [vmem:[%s1560_s1 + $0x18] sm:$0xff] (!%p222_p2)  ;;  %v278_v2 = vld [vmem:[%s1560_s1] sm:$0xff] (!%p222_p2)  ;;  %p255_p3 = scmp.lt.s32.totalorder (!%p222_p2), %s1053_s22, 1  ;;  %v388_v3 = vlaneseq (!%p222_p2)  ;;  %v1200_v8 = vmov (!%p222_p2), 0.0   ;;  %s1201_s13 = smov (!%p222_p2), 113  }
   0x6   : > { %225 = sbr.rel (%p222_p2) target bundleno = 1221 (0x4c5), region = 44  ;;  %v1073_v4 = vpack.c.bf16 (!%p222_p2), %v281_v1, %v279_v0  ;;  %v280_v5 = vld [vmem:[%s1560_s1 + $0x10] sm:$0xff] (!%p222_p2)  ;;  %v283_v6 = vld [vmem:[%s1560_s1 + $0x28] sm:$0xff] (!%p222_p2)  ;;  %v285_v7 = vld [vmem:[%s1560_s1 + $0x38] sm:$0xff] (!%p222_p2)  ;;  %362 = vmatprep.mubr.f32.mxu0 (!%p222_p2), %v1200_v8  ;;  %s1202_s18 = smov (!%p222_p2), 127   ;;  %vm294_vm0 = vcmask (!%p222_p2), 523264  }
   0x7   : > { %v1075_v9 = vpack.c.bf16 (!%p222_p2), %v280_v5, %v278_v2  ;;  %v1077_v10 = vpack.c.bf16 (!%p222_p2), %v285_v7, %v283_v6  ;;  %v282_v11 = vld [vmem:[%s1560_s1 + $0x20] sm:$0xff] (!%p222_p2)  ;;  %v284_v12 = vld [vmem:[%s1560_s1 + $0x30] sm:$0xff] (!%p222_p2)  ;;  %v287_v13 = vld [vmem:[%s1560_s1 + $0x48] sm:$0xff] (!%p222_p2)  ;;  %v389_v14 = vshrl.u32 (!%p222_p2), %v388_v3, 7  ;;  %s1203_s25 = smov (!%p222_p2), 1   ;;  %s1204_s26 = smov (!%p222_p2), 15  }
   0x8   : > { %1074 = vmatprep.subr.bf16.mxu0 (!%p222_p2), %v1073_v4  ;;  %v289_v15 = vld [vmem:[%s1560_s1 + $0x58] sm:$0xff] (!%p222_p2)  ;;  %v1079_v16 = vpack.c.bf16 (!%p222_p2), %v284_v12, %v282_v11  ;;  %v286_v17 = vld [vmem:[%s1560_s1 + $0x40] sm:$0xff] (!%p222_p2)  ;;  %v288_v20 = vld [vmem:[%s1560_s1 + $0x50] sm:$0xff] (!%p222_p2)  ;;  %s1205_s27 = smov (!%p222_p2), 17   ;;  %s1206_s28 = smov (!%p222_p2), 111   ;;  %vm433_vm1 = vcmask (!%p222_p2), 1039360  }
   0x9   : > { %1076 = vmatpush1.bf16.msra.mxu0 (!%p222_p2), %v1075_v9  ;;  %v390_v18 = vsub.s32 (!%p222_p2), 0, %v389_v14  ;;  %v1081_v19 = vpack.c.bf16 (!%p222_p2), %v289_v15, %v287_v13  ;;  %v291_v21 = vld [vmem:[%s1560_s1 + $0x68] sm:$0xff] (!%p222_p2)  ;;  %v1063_v22 = vld [vmem:[%s1559_s0 + $0x1] ss:$2 sm:$0x3] (!%p222_p2)  ;;  %v394_v23 = vsub.s32 (!%p222_p2), 1, %v389_v14  ;;  %v1083_v30 = vpack.c.bf16 (!%p222_p2), %v288_v20, %v286_v17 }
   0xa   : > { %1078 = vmatprep.subr.bf16.mxu0 (!%p222_p2), %v1077_v10  ;;  %v293_v24 = vld [vmem:[%s1560_s1 + $0x78] sm:$0xff] (!%p222_p2)  ;;  %v270_v27 = vld [vmem:[%s1559_s0] ss:$2 sm:$0x3] (!%p222_p2)  ;;  %v292_v34 = vld [vmem:[%s1560_s1 + $0x70] sm:$0xff] (!%p222_p2)  ;;  %s1207_s29 = smov (!%p222_p2), 126  }
   0xb   : > { %v412_v26 = vrot.slane (!%p222_p2), %v1063_v22, %v390_v18  ;;  %v391_v29 = vrot.slane (!%p222_p2), %v270_v27, %v390_v18  ;;  %v416_v31 = vrot.slane (!%p222_p2), %v1063_v22, %v394_v23  ;;  %v1085_v32 = vpack.c.bf16 (!%p222_p2), %v293_v24, %v291_v21  ;;  %v290_v33 = vld [vmem:[%s1560_s1 + $0x60] sm:$0xff] (!%p222_p2)  ;;  %s1209_s7 = smov (!%p222_p2), 110   ;;  %s1210_s8 = smov (!%p222_p2), 95  }
   0xc   : > { %v395_v35 = vrot.slane (!%p222_p2), %v270_v27, %v394_v23  ;;  %v1087_v36 = vpack.c.bf16 (!%p222_p2), %v292_v34, %v290_v33  ;;  %vm448_vm2 = vcmask (!%p222_p2), 7168   ;;  %vm421_vm3 = vcmask (!%p222_p2), 924672   ;;  %s1211_s9 = smov (!%p222_p2), 96   ;;  %s1212_s10 = smov (!%p222_p2), 94  }
   0xd   : > { %s1567_s22 = smov (!%p255_p3, %s1053_s22), 1  ;;  %1080 = vmatpush1.bf16.msra.mxu0 %v1079_v16  ;;  %417 = vrot.lane.b32.xlu0 %v412_v26, %s1201_s13  ;;  %vm460_vm4 = vcmask 121856   ;;  %vm472_vm5 = vcmask 138240   ;;  %vm400_vm6 = vcmask 908288   ;;  %vm503_vm7 = vcmask 1031168  }
   0xe   : > { %s1071_s23 = sshll.u32 %s1567_s22, 3  ;;  %1082 = vmatprep.subr.bf16.mxu0 %v1081_v19  ;;  %429 = vrot.lane.b32.xlu1 %v391_v29, %s1202_s18  ;;  %s1060_s19 = sshll.u32 %s1567_s22, 2  ;;  %vm518_vm8 = vcmask 916480   ;;  %vm541_vm9 = vcmask 900096   ;;  %vm556_vm10 = vcmask 785408   ;;  %vm571_vm11 = vcmask 777216  }
   0xf   : > { %s259_s30 = scalar_lea.vmem %s1563_s4, %s1071_s23  ;;  %s263_s24 = scalar_lea.vmem %s1564_s5, %s1060_s19  ;;  %vm586_vm12 = vcmask 769024   ;;  %vm675_vm13 = vcmask 1043456   ;;  %vm671_vm14 = vcmask 588800  }
  0x10   : > { %v369_v25 = vld [vmem:[%s259_s30] sm:$0xff]  ;;  %s1208_s30 = smov 112   ;;  %s1072_s15 = sshll.u32 %s1567_s22, 4 }
  0x11   : > { %v371_v28 = vcombine.high %v369_v25, %v369_v25  ;;  %373 = vst [vmem:[#allocation2 + $0x8] sm:$0xf] %v369_v25  ;;  %1084 = vmatpush1.bf16.msra.mxu0 %v1083_v30  ;;  %419 = vrot.lane.b32.xlu0 %v416_v31, %s1201_s13  ;;  %v277_v37 = vld [vmem:[%s263_s24] sm:$0xf] }
  0x12   : > { %1086 = vmatprep.subr.bf16.mxu0 %v1085_v32  ;;  %431 = vrot.lane.b32.xlu1 %v395_v35, %s1202_s18 }
  0x13   : > { %374 = vst [vmem:[#allocation2 + $0x10] sm:$0xf] %v371_v28 }
  0x15   : > { %1088 = vmatpush1.bf16.msra.mxu0 %v1087_v36  ;;  %444 = vrot.lane.b32.xlu0 %v412_v26, %s1203_s25 }
  0x16   : > { %446 = vrot.lane.b32.xlu1 %v416_v31, %s1203_s25 }
  0x18   : > { %1064 = vmatmul.mubr.msk.f32.vlgmr.msra.gmra.mrb[0].mxu0 %vm294_vm0, %v277_v37 }
  0x19   : > { %456 = vrot.lane.b32.xlu0 %v391_v29, %s1204_s26 }
  0x1a   : > { %458 = vrot.lane.b32.xlu1 %v395_v35, %s1204_s26 }
  0x1d   : > { %468 = vrot.lane.b32.xlu0 %v412_v26, %s1205_s27 }
  0x1e   : > { %470 = vrot.lane.b32.xlu1 %v416_v31, %s1205_s27 }
  0x21   : > { %396 = vrot.lane.b32.xlu0 %v391_v29, %s1206_s28 }
  0x22   : > { %398 = vrot.lane.b32.xlu1 %v395_v35, %s1206_s28 }
  0x26   : > { %483 = vrot.lane.b32.xlu1 %v1200_v8, %s1202_s18 }
  0x7f   : > { %v418_v38 = vpop.permute.xlu0 %417 }
  0x80   : > { %v1330_v39 = vmul.f32 0.0, %v418_v38  ;;  %v430_v40 = vpop.permute.xlu1 %429 }
  0x81   : > { %v1332_v41 = vmul.f32 0.0, %v430_v40 }
  0x82   : > { %497 = vrot.lane.b32.xlu0 %v1330_v39, %s1207_s29 }
  0x83   : > { %512 = vrot.lane.b32.xlu1 %v1332_v41, %s1208_s30  ;;  %v1344_v48 = vpop.permute.xlu0 %419 }
  0x84   : > { %v1338_v42 = vpop.permute.xlu1 %431  ;;  %v1366_v60 = vsel %vm421_vm3, %v418_v38, %v1344_v48 }
  0x85   : > { %v1352_v52 = vsel %vm433_vm1, %v430_v40, %v1338_v42 }
  0x87   : > { %v1346_v50 = vpop.permute.xlu0 %444 }
  0x88   : > { %v447_v43 = vpop.permute.xlu1 %446 }
  0x89   : > { %v1340_v44 = vmul.f32 0.0, %v447_v43  ;;  %v1359_v57 = vsel %vm448_vm2, %v1346_v50, %v447_v43 }
  0x8b   : > { %539 = vrot.lane.b32.xlu0 %v1340_v44, %s1209_s7  ;;  %v1361_v58 = vpop.permute.xlu0 %456 }
  0x8c   : > { %v459_v59 = vpop.permute.xlu1 %458 }
  0x8d   : > { %v1375_v2 = vsel %vm460_vm4, %v1361_v58, %v459_v59  ;;  %v1390_v11 = vmul.f32 0.0, %v459_v59 }
  0x8f   : > { %v1381_v4 = vpop.permute.xlu0 %468 }
  0x90   : > { %v471_v5 = vpop.permute.xlu1 %470 }
  0x91   : > { %v1386_v10 = vsel %vm472_vm5, %v1381_v4, %v471_v5  ;;  %v1401_v16 = vmul.f32 0.0, %v471_v5 }
  0x93   : > { %v397_v17 = vpop.permute.xlu0 %396 }
  0x94   : > { %v1405_v18 = vpop.permute.xlu1 %398  ;;  %v1410_v28 = vmul.f32 0.0, %v397_v17 }
  0x95   : > { %v1414_v29 = vsel %vm400_vm6, %v397_v17, %v1405_v18 }
  0x98   : > { %v484_v20 = vpop.permute.xlu1 %483 }
  0xeb   : > { %v364_v45 = vpop.f32.mrb[0].mxu0 }
  0xec   : > { %v377_v46 = vrot.slane %v364_v45, 4  ;;  %v366_v47 = vpop.f32.mrb[1].mxu0 }
  0xed   : > { %v378_v49 = vrot.slane %v366_v47, 4 }
  0xee   : > { %381 = vst [vmem:[#allocation2 + $0x8] sm:$0xf0] %v377_v46 }
  0xef   : > { %382 = vst [vmem:[#allocation2 + $0x10] sm:$0xf0] %v378_v49 }
  0xf4   : > { %v498_v19 = vpop.permute.xlu0 %497 }
  0xf5   : > { %v1348_v51 = vld [vmem:[#allocation2 + $0x8] sm:$0xff]  ;;  %v513_v22 = vpop.permute.xlu1 %512 }
  0xf6   : > { %v442_v53 = vld [vmem:[#allocation2 + $0x10] sm:$0xff]  ;;  %v439_v55 = vmul.f32 %v1348_v51, %v1352_v52  ;;  %v453_v61 = vmul.f32 %v1346_v50, %v1348_v51  ;;  %v427_v0 = vmul.f32 %v1348_v51, %v1366_v60  ;;  %v465_v3 = vmul.f32 %v1361_v58, %v1348_v51 }
  0xf7   : > { %v1126_v54 = vpack.i.bf16 %v442_v53, %v1348_v51  ;;  %v440_v56 = vmul.f32 %v442_v53, %v1338_v42  ;;  %v454_v63 = vmul.f32 %v1359_v57, %v442_v53  ;;  %v428_v1 = vmul.f32 %v442_v53, %v1344_v48 }
  0xf8   : > { %v466_v9 = vmul.f32 %v1375_v2, %v442_v53  ;;  %v477_v12 = vmul.f32 %v1381_v4, %v1348_v51  ;;  %v478_v13 = vmul.f32 %v1386_v10, %v442_v53  ;;  %v407_v25 = vmul.f32 %v442_v53, %v1405_v18 }
  0xf9   : > { %1127 = vrot.lane.b32.xlu1 %v1126_v54, %s1210_s8  ;;  %1112 = vrot.lane.b32.xlu0 %v1126_v54, %s1202_s18  ;;  %v1131_v62 = vpack.i.bf16 %v440_v56, %v439_v55  ;;  %v1136_v6 = vpack.i.bf16 %v454_v63, %v453_v61  ;;  %v1121_v7 = vpack.i.bf16 %v428_v1, %v427_v0 }
  0xfa   : > { %v1141_v14 = vpack.i.bf16 %v466_v9, %v465_v3  ;;  %v1146_v15 = vpack.i.bf16 %v478_v13, %v477_v12  ;;  %v406_v36 = vmul.f32 %v1348_v51, %v1414_v29 }
  0xfd   : > { %1117 = vrot.lane.b32.xlu0 %v1126_v54, %s1206_s28  ;;  %1132 = vrot.lane.b32.xlu1 %v1131_v62, %s1208_s30  ;;  %v540_v21 = vpop.permute.xlu0 %539 }
 0x101   : > { %1137 = vrot.lane.b32.xlu1 %v1136_v6, %s1209_s7  ;;  %1122 = vrot.lane.b32.xlu0 %v1121_v7, %s1207_s29 }
 0x105   : > { %1142 = vrot.lane.b32.xlu1 %v1141_v14, %s1211_s9  ;;  %554 = vrot.lane.b32.xlu0 %v1390_v11, %s1211_s9 }
 0x109   : > { %1147 = vrot.lane.b32.xlu1 %v1146_v15, %s1212_s10  ;;  %569 = vrot.lane.b32.xlu0 %v1200_v8, %s1210_s8 }
 0x10d   : > { %584 = vrot.lane.b32.xlu0 %v1401_v16, %s1212_s10 }
 0x16b   : > { %v1407_v23 = vpop.permute.xlu1 %1127  ;;  %v1113_v24 = vpop.permute.xlu0 %1112 }
 0x16c   : > { %v1115_v26 = vunpack.i.h.bf16 %v1113_v24  ;;  %v1114_v27 = vunpack.i.l.bf16 %v1113_v24  ;;  %v1129_v53 = vunpack.i.l.bf16 %v1407_v23 }
 0x16e   : > { %v594_v30 = vpack.c.bf16 %v1115_v26, %v407_v25  ;;  %v489_v31 = vsel %vm433_vm1, %v484_v20, %v1114_v27  ;;  %v490_v35 = vsel %vm433_vm1, %v1114_v27, %v1115_v26 }
 0x16f   : > { %v1118_v32 = vpop.permute.xlu0 %1117  ;;  %v1133_v33 = vpop.permute.xlu1 %1132  ;;  %v592_v34 = vpack.c.bf16 %v489_v31, %v1410_v28  ;;  %v593_v38 = vpack.c.bf16 %v490_v35, %v406_v36 }
 0x170   : > { %626 = vrot.lane.b32.xlu0 %v594_v30, %s1205_s27  ;;  %v1119_v40 = vunpack.i.l.bf16 %v1118_v32  ;;  %v1134_v55 = vunpack.i.l.bf16 %v1133_v33  ;;  %v1135_v0 = vunpack.i.h.bf16 %v1133_v33  ;;  %v1120_v9 = vunpack.i.h.bf16 %v1118_v32 }
 0x171   : > { %622 = vrot.lane.b32.xlu1 %v592_v34, %s1205_s27  ;;  %v1213_v32 = vmov 0  }
 0x172   : > { %v519_v1 = vsel %vm518_vm8, %v513_v22, %v1134_v55  ;;  %v520_v12 = vsel %vm518_vm8, %v1134_v55, %v1135_v0  ;;  %v1130_v22 = vunpack.i.h.bf16 %v1407_v23  ;;  %v528_v24 = vsel %vm400_vm6, %v1119_v40, %v1120_v9  ;;  %714 = vmatprep.mubr.bf16.mxu1 %v1213_v32  ;;  %975 = vmatprep.mubr.bf16.mxu0 %v1213_v32 }
 0x173   : > { %v1138_v37 = vpop.permute.xlu1 %1137  ;;  %v1123_v45 = vpop.permute.xlu0 %1122 }
 0x174   : > { %v1139_v43 = vunpack.i.l.bf16 %v1138_v37  ;;  %v1124_v47 = vunpack.i.l.bf16 %v1123_v45  ;;  %v1125_v56 = vunpack.i.h.bf16 %v1123_v45  ;;  %v1140_v6 = vunpack.i.h.bf16 %v1138_v37 }
 0x175   : > { %624 = vrot.lane.b32.xlu1 %v593_v38, %s1205_s27  ;;  %v572_v33 = vsel %vm571_vm11, %v1129_v53, %v1130_v22 }
 0x176   : > { %v598_v46 = vpack.c.bf16 %v1139_v43, %v1119_v40  ;;  %v504_v61 = vsel %vm503_vm7, %v498_v19, %v1124_v47  ;;  %v505_v7 = vsel %vm503_vm7, %v1124_v47, %v1125_v56  ;;  %v597_v13 = vpack.c.bf16 %v1135_v0, %v1125_v56 }
 0x177   : > { %v1143_v49 = vpop.permute.xlu1 %1142  ;;  %v555_v62 = vpop.permute.xlu0 %554  ;;  %v595_v5 = vpack.c.bf16 %v519_v1, %v504_v61  ;;  %v596_v15 = vpack.c.bf16 %v520_v12, %v505_v7  ;;  %v542_v19 = vsel %vm541_vm9, %v1139_v43, %v1140_v6  ;;  %v543_v20 = vsel %vm541_vm9, %v1140_v6, %v540_v21 }
 0x178   : > { %v1144_v54 = vunpack.i.l.bf16 %v1143_v49  ;;  %v1145_v17 = vunpack.i.h.bf16 %v1143_v49  ;;  %v599_v25 = vpack.c.bf16 %v542_v19, %v528_v24  ;;  %v600_v26 = vpack.c.bf16 %v543_v20, %v1120_v9 }
 0x179   : > { %634 = vrot.lane.b32.xlu1 %v598_v46, %s1205_s27 }
 0x17a   : > { %v601_v51 = vpack.c.bf16 %v1129_v53, %v1144_v54  ;;  %v557_v31 = vsel %vm556_vm10, %v1144_v54, %v1145_v17  ;;  %v558_v23 = vsel %vm556_vm10, %v1145_v17, %v555_v62 }
 0x17b   : > { %v1148_v59 = vpop.permute.xlu1 %1147  ;;  %v570_v14 = vpop.permute.xlu0 %569  ;;  %v602_v35 = vpack.c.bf16 %v572_v33, %v557_v31 }
 0x17c   : > { %v1149_v63 = vunpack.i.l.bf16 %v1148_v59  ;;  %640 = vrot.lane.b32.xlu0 %v601_v51, %s1205_s27  ;;  %v1150_v27 = vunpack.i.h.bf16 %v1148_v59  ;;  %v573_v30 = vsel %vm571_vm11, %v1130_v22, %v570_v14  ;;  %v383_v14 = vld [vmem:[%s1561_s2] sm:$0xf] }
 0x17d   : > { %v603_v34 = vpack.c.bf16 %v573_v30, %v558_v23 }
 0x17e   : > { %v604_v3 = vpack.c.bf16 %v1149_v63, %v1149_v63  ;;  %v587_v37 = vsel %vm586_vm12, %v1149_v63, %v1150_v27 }
 0x17f   : > { %v585_v21 = vpop.permute.xlu0 %584  ;;  %v605_v40 = vpack.c.bf16 %v587_v37, %v587_v37 }
 0x180   : > { %646 = vrot.lane.b32.xlu1 %v604_v3, %s1205_s27  ;;  %628 = vrot.lane.b32.xlu0 %v595_v5, %s1205_s27  ;;  %v588_v36 = vsel %vm586_vm12, %v1150_v27, %v585_v21 }
 0x181   : > { %v606_v38 = vpack.c.bf16 %v588_v36, %v588_v36 }
 0x184   : > { %632 = vrot.lane.b32.xlu1 %v597_v13, %s1205_s27  ;;  %630 = vrot.lane.b32.xlu0 %v596_v15, %s1205_s27 }
 0x188   : > { %636 = vrot.lane.b32.xlu1 %v599_v25, %s1205_s27  ;;  %638 = vrot.lane.b32.xlu0 %v600_v26, %s1205_s27 }
 0x18c   : > { %644 = vrot.lane.b32.xlu1 %v603_v34, %s1205_s27  ;;  %642 = vrot.lane.b32.xlu0 %v602_v35, %s1205_s27 }
 0x190   : > { %650 = vrot.lane.b32.xlu1 %v606_v38, %s1205_s27  ;;  %648 = vrot.lane.b32.xlu0 %v605_v40, %s1205_s27 }
 0x194   : > { %753 = vrot.lane.b32.xlu1 %v1200_v8, %s1202_s18  ;;  %767 = vrot.lane.b32.xlu0 %v1330_v39, %s1207_s29 }
 0x198   : > { %781 = vrot.lane.b32.xlu1 %v1332_v41, %s1208_s30  ;;  %807 = vrot.lane.b32.xlu0 %v1340_v44, %s1209_s7 }
 0x1e2   : > { %v627_v45 = vpop.permute.xlu0 %626 }
 0x1e3   : > { %v623_v43 = vpop.permute.xlu1 %622 }
 0x1e7   : > { %v625_v46 = vpop.permute.xlu1 %624 }
 0x1e8   : > { %v654_v47 = vsel %vm472_vm5, %v625_v46, %v627_v45  ;;  %v653_v49 = vsel %vm472_vm5, %v623_v43, %v625_v46 }
 0x1e9   : > { %682 = vmatprep.subr.bf16.mxu1 %v654_v47 }
 0x1ea   : > { %683 = vmatpush1.bf16.msra.mxu1 %v653_v49 }
 0x1eb   : > { %v635_v53 = vpop.permute.xlu1 %634 }
 0x1ee   : > { %v641_v54 = vpop.permute.xlu0 %640 }
 0x1f2   : > { %v647_v55 = vpop.permute.xlu1 %646  ;;  %v629_v51 = vpop.permute.xlu0 %628 }
 0x1f6   : > { %v633_v39 = vpop.permute.xlu1 %632  ;;  %v631_v56 = vpop.permute.xlu0 %630 }
 0x1f7   : > { %v656_v41 = vsel %vm472_vm5, %v631_v56, %v633_v39  ;;  %v655_v59 = vsel %vm472_vm5, %v629_v51, %v631_v56 }
 0x1f8   : > { %684 = vmatprep.subr.bf16.mxu1 %v656_v41 }
 0x1f9   : > { %685 = vmatpush1.bf16.msra.mxu1 %v655_v59 }
 0x1fa   : > { %v637_v44 = vpop.permute.xlu1 %636  ;;  %v639_v61 = vpop.permute.xlu0 %638 }
 0x1fb   : > { %v658_v62 = vsel %vm472_vm5, %v637_v44, %v639_v61  ;;  %v657_v63 = vsel %vm472_vm5, %v635_v53, %v637_v44 }
 0x1fc   : > { %686 = vmatprep.subr.bf16.mxu1 %v658_v62 }
 0x1fd   : > { %687 = vmatpush1.bf16.msra.mxu1 %v657_v63 }
 0x1fe   : > { %v645_v0 = vpop.permute.xlu1 %644  ;;  %v643_v1 = vpop.permute.xlu0 %642 }
 0x1ff   : > { %v660_v3 = vsel %vm472_vm5, %v643_v1, %v645_v0  ;;  %v659_v5 = vsel %vm472_vm5, %v641_v54, %v643_v1 }
 0x200   : > { %688 = vmatprep.subr.bf16.mxu1 %v660_v3 }
 0x201   : > { %689 = vmatpush1.bf16.msra.mxu1 %v659_v5 }
 0x202   : > { %v651_v6 = vpop.permute.xlu1 %650  ;;  %v649_v7 = vpop.permute.xlu0 %648 }
 0x203   : > { %v661_v9 = vsel %vm472_vm5, %v647_v55, %v649_v7  ;;  %v662_v12 = vsel %vm472_vm5, %v649_v7, %v651_v6 }
 0x204   : > { %1065 = vmatprep.subr.msk.bf16.mxu1 %vm675_vm13, %v662_v12  ;;  %v677_v13 = vsel %vm675_vm13, %v661_v9, 0 }
 0x205   : > { %691 = vmatpush1.bf16.msra.mxu1 %v677_v13 }
 0x208   : > { %1066 = vmatmul.mubr.msk.bf16.vlgmr.msra.gmra.mrb[0].mxu1 %vm671_vm14, %v383_v14 }
 0x2db   : > { %v716_v15 = vpop.f32.mrb[0].mxu1 }
 0x2dc   : > { %v718_v17 = vpop.f32.mrb[1].mxu1  ;;  %v736_v19 = vmul.f32 %v716_v15, %v1352_v52  ;;  %v741_v20 = vmul.f32 %v716_v15, %v1346_v50  ;;  %v733_v22 = vmul.f32 %v716_v15, %v1366_v60  ;;  %v744_v24 = vmul.f32 %v716_v15, %v1361_v58 }
 0x2dd   : > { %v720_v25 = vpop.f32.mrb[2].mxu1  ;;  %v1166_v26 = vpack.i.bf16 %v718_v17, %v716_v15  ;;  %v737_v27 = vmul.f32 %v718_v17, %v1338_v42  ;;  %v742_v31 = vmul.f32 %v718_v17, %v1359_v57  ;;  %v734_v32 = vmul.f32 %v718_v17, %v1344_v48  ;;  %v754_v48 = vpop.permute.xlu1 %753 }
 0x2de   : > { %v721_v30 = vpop.f32.mrb[3].mxu1  ;;  %v745_v21 = vmul.f32 %v718_v17, %v1375_v2  ;;  %v747_v23 = vmul.f32 %v716_v15, %v1381_v4  ;;  %v748_v52 = vmul.f32 %v718_v17, %v1386_v10  ;;  %v768_v57 = vpop.permute.xlu0 %767  ;;  %v731_v35 = vmul.f32 %v718_v17, %v1405_v18 }
 0x2df   : > { %1167 = vrot.lane.b32.xlu1 %v1166_v26, %s1210_s8  ;;  %1152 = vrot.lane.b32.xlu0 %v1166_v26, %s1202_s18  ;;  %v1171_v50 = vpack.i.bf16 %v737_v27, %v736_v19  ;;  %v1176_v58 = vpack.i.bf16 %v742_v31, %v741_v20  ;;  %v1161_v60 = vpack.i.bf16 %v734_v32, %v733_v22  ;;  %s268_s18 = scalar_lea.vmem %s1565_s6, %s1072_s15 }
 0x2e0   : > { %v1181_v33 = vpack.i.bf16 %v745_v21, %v744_v24  ;;  %v1186_v42 = vpack.i.bf16 %v748_v52, %v747_v23  ;;  %v730_v45 = vmul.f32 %v716_v15, %v1414_v29 }
 0x2e1   : > { %v782_v2 = vpop.permute.xlu1 %781 }
 0x2e2   : > { %v808_v4 = vpop.permute.xlu0 %807 }
 0x2e3   : > { %1157 = vrot.lane.b32.xlu0 %v1166_v26, %s1206_s28  ;;  %1172 = vrot.lane.b32.xlu1 %v1171_v50, %s1208_s30 }
 0x2e7   : > { %1177 = vrot.lane.b32.xlu1 %v1176_v58, %s1209_s7  ;;  %1162 = vrot.lane.b32.xlu0 %v1161_v60, %s1207_s29 }
 0x2eb   : > { %1182 = vrot.lane.b32.xlu1 %v1181_v33, %s1211_s9  ;;  %821 = vrot.lane.b32.xlu0 %v1390_v11, %s1211_s9 }
 0x2ef   : > { %1187 = vrot.lane.b32.xlu1 %v1186_v42, %s1212_s10  ;;  %835 = vrot.lane.b32.xlu0 %v1200_v8, %s1210_s8 }
 0x2f3   : > { %849 = vrot.lane.b32.xlu0 %v1401_v16, %s1212_s10 }
 0x351   : > { %v1499_v10 = vpop.permute.xlu1 %1167  ;;  %v1153_v34 = vpop.permute.xlu0 %1152 }
 0x352   : > { %v1155_v36 = vunpack.i.h.bf16 %v1153_v34  ;;  %v1154_v37 = vunpack.i.l.bf16 %v1153_v34  ;;  %v1170_v20 = vunpack.i.h.bf16 %v1499_v10 }
 0x354   : > { %v858_v11 = vpack.c.bf16 %v1155_v36, %v731_v35  ;;  %v759_v38 = vsel %vm433_vm1, %v754_v48, %v1154_v37  ;;  %v760_v16 = vsel %vm433_vm1, %v1154_v37, %v1155_v36 }
 0x355   : > { %v1173_v40 = vpop.permute.xlu1 %1172  ;;  %v1158_v43 = vpop.permute.xlu0 %1157  ;;  %v856_v8 = vpack.c.bf16 %v759_v38, %v1410_v28  ;;  %v857_v47 = vpack.c.bf16 %v760_v16, %v730_v45  ;;  %v1169_v28 = vunpack.i.l.bf16 %v1499_v10 }
 0x356   : > { %890 = vrot.lane.b32.xlu0 %v858_v11, %s1205_s27  ;;  %v1159_v18 = vunpack.i.l.bf16 %v1158_v43  ;;  %v1174_v56 = vunpack.i.l.bf16 %v1173_v40  ;;  %v1175_v63 = vunpack.i.h.bf16 %v1173_v40  ;;  %v1160_v7 = vunpack.i.h.bf16 %v1158_v43 }
 0x357   : > { %886 = vrot.lane.b32.xlu1 %v856_v8, %s1205_s27  ;;  %v837_v21 = vsel %vm571_vm11, %v1169_v28, %v1170_v20 }
 0x358   : > { %v787_v0 = vsel %vm518_vm8, %v782_v2, %v1174_v56  ;;  %v788_v9 = vsel %vm518_vm8, %v1174_v56, %v1175_v63  ;;  %v796_v22 = vsel %vm400_vm6, %v1159_v18, %v1160_v7 }
 0x359   : > { %v1178_v46 = vpop.permute.xlu1 %1177  ;;  %v1163_v53 = vpop.permute.xlu0 %1162 }
 0x35a   : > { %v1179_v49 = vunpack.i.l.bf16 %v1178_v46  ;;  %v1164_v55 = vunpack.i.l.bf16 %v1163_v53  ;;  %v1165_v59 = vunpack.i.h.bf16 %v1163_v53  ;;  %v1180_v5 = vunpack.i.h.bf16 %v1178_v46 }
 0x35b   : > { %888 = vrot.lane.b32.xlu1 %v857_v47, %s1205_s27 }
 0x35c   : > { %v862_v54 = vpack.c.bf16 %v1179_v49, %v1159_v18  ;;  %v773_v29 = vsel %vm503_vm7, %v768_v57, %v1164_v55  ;;  %v774_v6 = vsel %vm503_vm7, %v1164_v55, %v1165_v59  ;;  %v861_v12 = vpack.c.bf16 %v1175_v63, %v1165_v59 }
 0x35d   : > { %v1183_v51 = vpop.permute.xlu1 %1182  ;;  %v822_v61 = vpop.permute.xlu0 %821  ;;  %v859_v3 = vpack.c.bf16 %v787_v0, %v773_v29  ;;  %v860_v14 = vpack.c.bf16 %v788_v9, %v774_v6  ;;  %v810_v17 = vsel %vm541_vm9, %v1180_v5, %v808_v4  ;;  %v809_v19 = vsel %vm541_vm9, %v1179_v49, %v1180_v5 }
 0x35e   : > { %v1184_v39 = vunpack.i.l.bf16 %v1183_v51  ;;  %v1185_v15 = vunpack.i.h.bf16 %v1183_v51  ;;  %v864_v24 = vpack.c.bf16 %v810_v17, %v1160_v7  ;;  %v863_v25 = vpack.c.bf16 %v809_v19, %v796_v22 }
 0x35f   : > { %898 = vrot.lane.b32.xlu1 %v862_v54, %s1205_s27 }
 0x360   : > { %v865_v41 = vpack.c.bf16 %v1169_v28, %v1184_v39  ;;  %v823_v30 = vsel %vm556_vm10, %v1184_v39, %v1185_v15  ;;  %v824_v32 = vsel %vm556_vm10, %v1185_v15, %v822_v61  ;;  %v725_v39 = vld [vmem:[%s1562_s3] sm:$0xf] }
 0x361   : > { %v1188_v44 = vpop.permute.xlu1 %1187  ;;  %v836_v13 = vpop.permute.xlu0 %835  ;;  %v866_v50 = vpack.c.bf16 %v837_v21, %v823_v30 }
 0x362   : > { %v1189_v62 = vunpack.i.l.bf16 %v1188_v44  ;;  %904 = vrot.lane.b32.xlu0 %v865_v41, %s1205_s27  ;;  %v1190_v26 = vunpack.i.h.bf16 %v1188_v44  ;;  %v838_v27 = vsel %vm571_vm11, %v1170_v20, %v836_v13 }
 0x363   : > { %v867_v23 = vpack.c.bf16 %v838_v27, %v824_v32 }
 0x364   : > { %v868_v1 = vpack.c.bf16 %v1189_v62, %v1189_v62  ;;  %v851_v58 = vsel %vm586_vm12, %v1189_v62, %v1190_v26 }
 0x365   : > { %v850_v31 = vpop.permute.xlu0 %849  ;;  %v869_v33 = vpack.c.bf16 %v851_v58, %v851_v58 }
 0x366   : > { %892 = vrot.lane.b32.xlu0 %v859_v3, %s1205_s27  ;;  %910 = vrot.lane.b32.xlu1 %v868_v1, %s1205_s27  ;;  %v852_v52 = vsel %vm586_vm12, %v1190_v26, %v850_v31 }
 0x367   : > { %v870_v60 = vpack.c.bf16 %v852_v52, %v852_v52 }
 0x36a   : > { %894 = vrot.lane.b32.xlu0 %v860_v14, %s1205_s27  ;;  %896 = vrot.lane.b32.xlu1 %v861_v12, %s1205_s27 }
 0x36e   : > { %902 = vrot.lane.b32.xlu0 %v864_v24, %s1205_s27  ;;  %900 = vrot.lane.b32.xlu1 %v863_v25, %s1205_s27 }
 0x372   : > { %906 = vrot.lane.b32.xlu0 %v866_v50, %s1205_s27  ;;  %908 = vrot.lane.b32.xlu1 %v867_v23, %s1205_s27 }
 0x376   : > { %912 = vrot.lane.b32.xlu0 %v869_v33, %s1205_s27  ;;  %914 = vrot.lane.b32.xlu1 %v870_v60, %s1205_s27 }
 0x3c8   : > { %v891_v48 = vpop.permute.xlu0 %890 }
 0x3c9   : > { %v887_v42 = vpop.permute.xlu1 %886 }
 0x3cd   : > { %v889_v57 = vpop.permute.xlu1 %888 }
 0x3ce   : > { %v916_v2 = vsel %vm472_vm5, %v887_v42, %v889_v57  ;;  %v917_v4 = vsel %vm472_vm5, %v889_v57, %v891_v48 }
 0x3cf   : > { %943 = vmatprep.subr.bf16.mxu0 %v917_v4 }
 0x3d0   : > { %944 = vmatpush1.bf16.msra.mxu0 %v916_v2 }
 0x3d1   : > { %v899_v10 = vpop.permute.xlu1 %898 }
 0x3d4   : > { %v905_v34 = vpop.permute.xlu0 %904 }
 0x3d8   : > { %v893_v35 = vpop.permute.xlu0 %892  ;;  %v911_v36 = vpop.permute.xlu1 %910 }
 0x3dc   : > { %v895_v37 = vpop.permute.xlu0 %894  ;;  %v897_v11 = vpop.permute.xlu1 %896 }
 0x3dd   : > { %v918_v38 = vsel %vm472_vm5, %v893_v35, %v895_v37  ;;  %v919_v40 = vsel %vm472_vm5, %v895_v37, %v897_v11 }
 0x3de   : > { %945 = vmatprep.subr.bf16.mxu0 %v919_v40 }
 0x3df   : > { %946 = vmatpush1.bf16.msra.mxu0 %v918_v38 }
 0x3e0   : > { %v903_v43 = vpop.permute.xlu0 %902  ;;  %v901_v8 = vpop.permute.xlu1 %900 }
 0x3e1   : > { %v920_v16 = vsel %vm472_vm5, %v899_v10, %v901_v8  ;;  %v921_v45 = vsel %vm472_vm5, %v901_v8, %v903_v43 }
 0x3e2   : > { %947 = vmatprep.subr.bf16.mxu0 %v921_v45 }
 0x3e3   : > { %948 = vmatpush1.bf16.msra.mxu0 %v920_v16 }
 0x3e4   : > { %v907_v46 = vpop.permute.xlu0 %906  ;;  %v909_v47 = vpop.permute.xlu1 %908 }
 0x3e5   : > { %v922_v18 = vsel %vm472_vm5, %v905_v34, %v907_v46  ;;  %v923_v49 = vsel %vm472_vm5, %v907_v46, %v909_v47 }
 0x3e6   : > { %949 = vmatprep.subr.bf16.mxu0 %v923_v49 }
 0x3e7   : > { %950 = vmatpush1.bf16.msra.mxu0 %v922_v18 }
 0x3e8   : > { %v913_v53 = vpop.permute.xlu0 %912  ;;  %v915_v54 = vpop.permute.xlu1 %914 }
 0x3e9   : > { %v924_v55 = vsel %vm472_vm5, %v911_v36, %v913_v53  ;;  %v925_v51 = vsel %vm472_vm5, %v913_v53, %v915_v54 }
 0x3ea   : > { %v938_v28 = vsel %vm675_vm13, %v924_v55, 0  ;;  %1067 = vmatprep.subr.msk.bf16.mxu0 %vm675_vm13, %v925_v51 }
 0x3eb   : > { %952 = vmatpush1.bf16.msra.mxu0 %v938_v28 }
 0x3ee   : > { %1068 = vmatmul.mubr.msk.bf16.vlgmr.msra.gmra.mrb[4].mxu0 %vm671_vm14, %v725_v39 }
 0x4c1   : > { %v977_v56 = vpop.f32.mrb[4].mxu0 }
 0x4c2   : > { %984 = vst [vmem:[%s268_s18] sm:$0xff] %v977_v56  ;;  %v979_v41 = vpop.f32.mrb[5].mxu0 }
 0x4c3   : > { %985 = vst [vmem:[%s268_s18 + $0x8] sm:$0xff] %v979_v41  ;;  %v981_v59 = vpop.f32.mrb[6].mxu0 }
 0x4c4   : > { %v982_v44 = vpop.f32.mrb[7].mxu0 }
 0x4c5 PF: > { %s16_s21 = sadd.s32 1, %s1198_s21  }
 0x4c6   : > { %p13_p4 = scmp.ge.s32.totalorder %s16_s21, 4  }
 0x4c8   :  { %15 = sbr.rel (!%p13_p4) target bundleno = 1 (0x1), region = 78 }

</bundles_post_ra>
